<compile_context>
chip_gen: v6e
topology: v6e:2x2x1
jax: 0.10.0
libtpu: 0.0.40
codegen_flags: <defaults>
</compile_context>

<pallas_src>
import math

import jax
import jax.numpy as jnp
from jax.experimental import pallas as pl
from jax.experimental.pallas import tpu as pltpu


# ----------------------------------------------------------------------------
# Kernel
# ----------------------------------------------------------------------------
def _sigmoid(x):
    # One EUP op (tanh) instead of exp + divide.
    return 0.5 * jnp.tanh(0.5 * x) + 0.5


def actor_kernel(x_ref, h0_ref,
                 w1_ref, b1_ref,
                 w2_ref, b2_ref,
                 wih_ref, bih_ref,
                 whh_ref, bhh_ref,
                 w3_ref, b3_ref,
                 out_ref, hlast_ref,
                 h_scr):
    t = pl.program_id(1)
    Hp = hlast_ref.shape[-1]          # padded hidden width (multiple of 128)
    cdt = w1_ref.dtype                # matmul operand dtype (bf16)

    # Seed the carried hidden state from the (zero-padded) h0 block at t == 0.
    @pl.when(t == 0)
    def _():
        h_scr[...] = h0_ref[...]

    h = h_scr[...]                    # f32 carry

    # fc1 + ReLU  (x is already bf16 -- streamed half-width)
    a1 = jnp.dot(x_ref[...], w1_ref[...],
                 preferred_element_type=jnp.float32) + b1_ref[...]
    a1 = jnp.maximum(a1, 0.0)

    # fc2 + ReLU
    a2 = jnp.dot(a1.astype(cdt), w2_ref[...],
                 preferred_element_type=jnp.float32) + b2_ref[...]
    a2 = jnp.maximum(a2, 0.0)

    # GRUCell (PyTorch semantics, gate order [r | z | n]); two full 3Hp-wide
    # matmuls, gates sliced on 128-aligned boundaries.
    gi = jnp.dot(a2.astype(cdt), wih_ref[...],
                 preferred_element_type=jnp.float32) + bih_ref[...]
    gh = jnp.dot(h.astype(cdt), whh_ref[...],
                 preferred_element_type=jnp.float32) + bhh_ref[...]

    r = _sigmoid(gi[:, :Hp] + gh[:, :Hp])
    z = _sigmoid(gi[:, Hp:2 * Hp] + gh[:, Hp:2 * Hp])
    n = jnp.tanh(gi[:, 2 * Hp:] + r * gh[:, 2 * Hp:])
    h_new = (1.0 - z) * n + z * h

    # fc3 + tanh
    out = jnp.tanh(jnp.dot(h_new.astype(cdt), w3_ref[...],
                           preferred_element_type=jnp.float32) + b3_ref[...])

    out_ref[...] = out.astype(out_ref.dtype)
    h_scr[...] = h_new

    @pl.when(t == pl.num_programs(1) - 1)
    def _():
        hlast_ref[...] = h_new


# ----------------------------------------------------------------------------
# Parameter init (logical, PyTorch-equivalent, pre-transposed) + packing
# ----------------------------------------------------------------------------
def _uniform(key, shape, bound):
    return jax.random.uniform(key, shape, minval=-bound, maxval=bound,
                              dtype=jnp.float32)


def init_actor_params(key, nb_states, hidden_dim, nb_actions=1, init_w=0.003):
    """Logical f32 params, weights stored pre-transposed (in, out).

    fc1/fc2 weights use fanin_init with fanin = weight.size()[0] = out_features
    (exactly what the reference module does).  fc3 and the GRUCell keep
    PyTorch's default init -- the reference never applies init_w to fc3, so
    `init_w` is accepted for interface parity but unused.
    """
    del init_w
    keys = jax.random.split(key, 10)
    k = iter(keys)

    fan12 = 1.0 / math.sqrt(hidden_dim)
    b1b = 1.0 / math.sqrt(nb_states)
    b2b = 1.0 / math.sqrt(hidden_dim)
    grub = 1.0 / math.sqrt(hidden_dim)
    fc3b = 1.0 / math.sqrt(hidden_dim)

    return {
        "w1": _uniform(next(k), (nb_states, hidden_dim), fan12),
        "b1": _uniform(next(k), (hidden_dim,), b1b),
        "w2": _uniform(next(k), (hidden_dim, hidden_dim), fan12),
        "b2": _uniform(next(k), (hidden_dim,), b2b),
        # GRUCell weight_ih/(hh) are (3H, H) in torch; stored here as (H, 3H).
        "w_ih": _uniform(next(k), (hidden_dim, 3 * hidden_dim), grub),
        "b_ih": _uniform(next(k), (3 * hidden_dim,), grub),
        "w_hh": _uniform(next(k), (hidden_dim, 3 * hidden_dim), grub),
        "b_hh": _uniform(next(k), (3 * hidden_dim,), grub),
        "w3": _uniform(next(k), (hidden_dim, nb_actions), fc3b),
        "b3": _uniform(next(k), (nb_actions,), fc3b),
    }


def _cdiv(a, b):
    return (a + b - 1) // b


def _round_up(n, m):
    return _cdiv(n, m) * m


def _pad2(a, rows, cols):
    r, c = a.shape
    return jnp.pad(a, ((0, rows - r), (0, cols - c)))


def pack_actor_params(p, dtype=jnp.bfloat16):
    """Pad and down-cast logical params into the kernel layout.

    All feature dims are zero-padded to multiples of 128 (exact: padded weight
    rows/cols are zero so real lanes are unchanged and padded hidden lanes
    stay identically zero through the GRU blend).  GRU gate blocks are padded
    independently so the in-kernel [:, g*Hp:(g+1)*Hp] slices are tile-aligned.
    Weights go to `dtype` (bf16); biases stay f32.
    """
    S, H = p["w1"].shape
    A = p["w3"].shape[1]
    Sp, Hp, Ap = _round_up(S, 128), _round_up(H, 128), _round_up(A, 128)

    def pad_gru_w(w):                       # (H, 3H) -> (Hp, 3Hp)
        out = jnp.zeros((Hp, 3 * Hp), jnp.float32)
        for g in range(3):
            out = out.at[:H, g * Hp:g * Hp + H].set(w[:, g * H:(g + 1) * H])
        return out

    def pad_gru_b(b):                       # (3H,) -> (1, 3Hp)
        out = jnp.zeros((1, 3 * Hp), jnp.float32)
        for g in range(3):
            out = out.at[0, g * Hp:g * Hp + H].set(b[g * H:(g + 1) * H])
        return out

    return {
        "w1": _pad2(p["w1"], Sp, Hp).astype(dtype),
        "b1": _pad2(p["b1"][None, :], 1, Hp),
        "w2": _pad2(p["w2"], Hp, Hp).astype(dtype),
        "b2": _pad2(p["b2"][None, :], 1, Hp),
        "w_ih": pad_gru_w(p["w_ih"]).astype(dtype),
        "b_ih": pad_gru_b(p["b_ih"]),
        "w_hh": pad_gru_w(p["w_hh"]).astype(dtype),
        "b_hh": pad_gru_b(p["b_hh"]),
        "w3": _pad2(p["w3"], Hp, Ap).astype(dtype),
        "b3": _pad2(p["b3"][None, :], 1, Ap),
    }


# ----------------------------------------------------------------------------
# Batch tiling
# ----------------------------------------------------------------------------
def _is_two_core_chip():
    """True on v7x (2 TensorCores/chip); conservative False if unknown."""
    try:
        return "v7" in jax.devices()[0].device_kind.lower()
    except Exception:  # pragma: no cover
        return False


def _choose_block(B, two_core):
    """Batch block size: multiple of 16 (bf16 sublane packing), balanced blocks
    for B>256 (min pad waste), and >=2 blocks on 2-TC chips when possible."""
    if B > 256:
        nblk = _cdiv(B, 256)
    elif two_core and B >= 16:
        nblk = 2
    else:
        nblk = 1
    bm = _round_up(_cdiv(B, nblk), 16)
    bp = _round_up(B, bm)
    return bm, bp


# ----------------------------------------------------------------------------
# Forward wrappers
# ----------------------------------------------------------------------------
def actor_rollout(x_seq, h0, packed, nb_actions, out_dtype=jnp.float32):
    """Run T recurrent Actor steps in a single pallas_call.

    x_seq: (T, B, nb_states), h0: (B, hidden_dim).
    Returns (actions (T, B, nb_actions), h_final (B, hidden_dim)).
    Weights are DMA'd into VMEM once per rollout; h is carried in VMEM scratch.
    Set out_dtype=jnp.bfloat16 to halve action writeback bytes if downstream
    consumers tolerate it (tanh-bounded output).
    """
    T, B, _ = x_seq.shape
    H = h0.shape[1]
    A = nb_actions
    Sp, Hp = packed["w1"].shape
    Ap = packed["w3"].shape[1]

    BM, Bp = _choose_block(B, _is_two_core_chip())
    nblk = Bp // BM

    # Pad once per rollout (not per step); x streams in bf16.
    x_p = jnp.pad(x_seq.astype(jnp.bfloat16),
                  ((0, 0), (0, Bp - B), (0, Sp - x_seq.shape[2])))
    h_p = jnp.pad(h0.astype(jnp.float32), ((0, Bp - B), (0, Hp - H)))

    weight_args = (
        packed["w1"], packed["b1"],
        packed["w2"], packed["b2"],
        packed["w_ih"], packed["b_ih"],
        packed["w_hh"], packed["b_hh"],
        packed["w3"], packed["b3"],
    )
    args = (x_p, h_p) + weight_args

    in_specs = [
        pl.BlockSpec((None, BM, Sp), lambda i, t: (t, i, 0)),   # x[t] block
        pl.BlockSpec((BM, Hp), lambda i, t: (i, 0)),            # h0 block
    ]
    # Constant index_map: weights/biases stay resident in VMEM for the whole
    # rollout.  TODO(synk): on v7x with very large hidden_dim, single-buffer
    # the residents (pipeline_mode=pl.Buffered(1)) to halve weight VMEM.
    in_specs += [pl.BlockSpec(a.shape, lambda i, t: (0, 0)) for a in weight_args]

    out_specs = (
        pl.BlockSpec((None, BM, Ap), lambda i, t: (t, i, 0)),   # actions[t]
        pl.BlockSpec((BM, Hp), lambda i, t: (i, 0)),            # h_final
    )
    out_shape = (
        jax.ShapeDtypeStruct((T, Bp, Ap), out_dtype),
        jax.ShapeDtypeStruct((Bp, Hp), jnp.float32),
    )

    out_isz = jnp.dtype(out_dtype).itemsize
    weights_bytes = sum(int(a.size) * a.dtype.itemsize for a in weight_args)

    flops = 2 * T * Bp * (Sp * Hp + Hp * Hp + 6 * Hp * Hp + Hp * Ap)
    transcendentals = T * Bp * (3 * Hp + Ap)
    bytes_accessed = (weights_bytes
                      + T * Bp * Sp * 2          # x (bf16)
                      + Bp * Hp * 4              # h0
                      + T * Bp * Ap * out_isz    # actions
                      + Bp * Hp * 4)             # h_final

    # Only raise the scoped-VMEM limit when the estimate actually needs it
    # (weights double-buffered by the pipeline + streamed blocks + scratch).
    vmem_est = (2 * weights_bytes
                + 2 * BM * (Sp * 2 + Hp * 4)
                + 2 * BM * (Ap * out_isz + Hp * 4)
                + BM * Hp * 4
                + 8 * BM * Hp * 4)
    cp_kwargs = {"dimension_semantics": ("parallel", "arbitrary")}
    if vmem_est > (16 << 20):
        cp_kwargs["vmem_limit_bytes"] = int(min(vmem_est, 64 << 20))

    out_p, hlast_p = pl.pallas_call(
        actor_kernel,
        out_shape=out_shape,
        grid=(nblk, T),
        in_specs=in_specs,
        out_specs=out_specs,
        scratch_shapes=[pltpu.VMEM((BM, Hp), jnp.float32)],
        compiler_params=pltpu.CompilerParams(**cp_kwargs),
        cost_estimate=pl.CostEstimate(
            flops=int(flops),
            transcendentals=int(transcendentals),
            bytes_accessed=int(bytes_accessed)),
    )(*args)

    return out_p[:, :B, :A], hlast_p[:B, :H]


def actor_forward(x, hidden_state, packed, nb_actions, out_dtype=jnp.float32):
    """Single Actor step (the PyTorch module's forward): (out, h_new)."""
    out_seq, h_new = actor_rollout(x[None], hidden_state, packed, nb_actions,
                                   out_dtype=out_dtype)
    return out_seq[0], h_new


# ----------------------------------------------------------------------------
# Pure-JAX reference (same mixed precision: bf16 matmul operands, f32 accum)
# ----------------------------------------------------------------------------
def actor_step_ref(x, h, p, compute_dtype=jnp.bfloat16):
    def mm(a, w):
        return jnp.dot(a.astype(compute_dtype), w.astype(compute_dtype),
                       preferred_element_type=jnp.float32)

    a1 = jnp.maximum(mm(x, p["w1"]) + p["b1"], 0.0)
    a2 = jnp.maximum(mm(a1, p["w2"]) + p["b2"], 0.0)
    gi = mm(a2, p["w_ih"]) + p["b_ih"]
    gh = mm(h, p["w_hh"]) + p["b_hh"]
    H = h.shape[1]
    r = jax.nn.sigmoid(gi[:, :H] + gh[:, :H])
    z = jax.nn.sigmoid(gi[:, H:2 * H] + gh[:, H:2 * H])
    n = jnp.tanh(gi[:, 2 * H:] + r * gh[:, 2 * H:])
    h_new = (1.0 - z) * n + z * h
    out = jnp.tanh(mm(h_new, p["w3"]) + p["b3"])
    return out, h_new


def actor_rollout_ref(x_seq, h, p):
    outs = []
    for t in range(x_seq.shape[0]):
        o, h = actor_step_ref(x_seq[t], h, p)
        outs.append(o)
    return jnp.stack(outs), h


if __name__ == "__main__":
    T = 4            # rollout length
    B = 2            # batch
    NB_STATES = 16   # input features
    HIDDEN = 32      # hidden_dim
    NB_ACTIONS = 1

    key = jax.random.PRNGKey(0)
    kx, kh, kp = jax.random.split(key, 3)

    x_seq = jax.random.normal(kx, (T, B, NB_STATES), dtype=jnp.float32)
    h0 = jax.random.normal(kh, (B, HIDDEN), dtype=jnp.float32)

    params = init_actor_params(kp, NB_STATES, HIDDEN, NB_ACTIONS)
    packed = pack_actor_params(params, dtype=jnp.bfloat16)

    # --- single step (module forward semantics) ---
    out1, h1 = actor_forward(x_seq[0], h0, packed, nb_actions=NB_ACTIONS)
    out1 = jax.block_until_ready(out1)
    h1 = jax.block_until_ready(h1)
    out1_ref, h1_ref = actor_step_ref(x_seq[0], h0, params)
    assert out1.shape == (B, NB_ACTIONS) and h1.shape == (B, HIDDEN)
    assert jnp.allclose(out1, out1_ref, atol=2e-3, rtol=2e-3), "step action mismatch"
    assert jnp.allclose(h1, h1_ref, atol=2e-3, rtol=2e-3), "step hidden mismatch"

    # --- fused recurrent rollout (weights DMA'd once, h carried in VMEM) ---
    out_seq, h_fin = actor_rollout(x_seq, h0, packed, nb_actions=NB_ACTIONS)
    out_seq = jax.block_until_ready(out_seq)
    h_fin = jax.block_until_ready(h_fin)
    out_seq_ref, h_fin_ref = actor_rollout_ref(x_seq, h0, params)
    assert out_seq.shape == (T, B, NB_ACTIONS) and h_fin.shape == (B, HIDDEN)
    assert jnp.allclose(out_seq, out_seq_ref, atol=2e-3, rtol=2e-3), "rollout action mismatch"
    assert jnp.allclose(h_fin, h_fin_ref, atol=2e-3, rtol=2e-3), "rollout hidden mismatch"

    print("KERNEL_OK")
</pallas_src>

<mosaic_0001>
module attributes {stable_mosaic.version = 11 : i64} {
  func.func @actor_kernel(%arg0: i32, %arg1: i32, %arg2: memref<1x16x128xbf16, #tpu.memory_space<vmem>>, %arg3: memref<16x128xf32, #tpu.memory_space<vmem>>, %arg4: memref<128x128xbf16, #tpu.memory_space<vmem>>, %arg5: memref<1x128xf32, #tpu.memory_space<vmem>>, %arg6: memref<128x128xbf16, #tpu.memory_space<vmem>>, %arg7: memref<1x128xf32, #tpu.memory_space<vmem>>, %arg8: memref<128x384xbf16, #tpu.memory_space<vmem>>, %arg9: memref<1x384xf32, #tpu.memory_space<vmem>>, %arg10: memref<128x384xbf16, #tpu.memory_space<vmem>>, %arg11: memref<1x384xf32, #tpu.memory_space<vmem>>, %arg12: memref<128x128xbf16, #tpu.memory_space<vmem>>, %arg13: memref<1x128xf32, #tpu.memory_space<vmem>>, %arg14: memref<1x16x128xf32, #tpu.memory_space<vmem>>, %arg15: memref<16x128xf32, #tpu.memory_space<vmem>>, %arg16: memref<16x128xf32, #tpu.memory_space<vmem>>) attributes {dimension_semantics = [#tpu.dimension_semantics<parallel>, #tpu.dimension_semantics<arbitrary>], iteration_bounds = array<i64: 1, 1>, scalar_prefetch = 0 : i64, scratch_operands = 1 : i64, tpu.core_type = #tpu.core_type<tc>, window_params = [{transform_indices = @transform_0, window_bounds = array<i64: 1, 16, 128>}, {transform_indices = @transform_1, window_bounds = array<i64: 16, 128>}, {pipeline_mode = #tpu.pipeline_mode<synchronous>, transform_indices = @transform_2, window_bounds = array<i64: 128, 128>}, {pipeline_mode = #tpu.pipeline_mode<synchronous>, transform_indices = @transform_3, window_bounds = array<i64: 1, 128>}, {pipeline_mode = #tpu.pipeline_mode<synchronous>, transform_indices = @transform_4, window_bounds = array<i64: 128, 128>}, {pipeline_mode = #tpu.pipeline_mode<synchronous>, transform_indices = @transform_5, window_bounds = array<i64: 1, 128>}, {pipeline_mode = #tpu.pipeline_mode<synchronous>, transform_indices = @transform_6, window_bounds = array<i64: 128, 384>}, {pipeline_mode = #tpu.pipeline_mode<synchronous>, transform_indices = @transform_7, window_bounds = array<i64: 1, 384>}, {pipeline_mode = #tpu.pipeline_mode<synchronous>, transform_indices = @transform_8, window_bounds = array<i64: 128, 384>}, {pipeline_mode = #tpu.pipeline_mode<synchronous>, transform_indices = @transform_9, window_bounds = array<i64: 1, 384>}, {pipeline_mode = #tpu.pipeline_mode<synchronous>, transform_indices = @transform_10, window_bounds = array<i64: 128, 128>}, {pipeline_mode = #tpu.pipeline_mode<synchronous>, transform_indices = @transform_11, window_bounds = array<i64: 1, 128>}, {transform_indices = @transform_12, window_bounds = array<i64: 1, 16, 128>}, {transform_indices = @transform_13, window_bounds = array<i64: 16, 128>}]} {
    %c0_i32 = arith.constant 0 : i32
    %0 = arith.cmpi eq, %arg1, %c0_i32 : i32
    %1 = arith.extui %0 : i1 to i32
    %c0_i32_0 = arith.constant 0 : i32
    %2 = arith.cmpi ne, %1, %c0_i32_0 : i32
    scf.if %2 {
      %c0_45 = arith.constant 0 : index
      %c0_46 = arith.constant 0 : index
      %77 = vector.load %arg3[%c0_45, %c0_46] : memref<16x128xf32, #tpu.memory_space<vmem>>, vector<16x128xf32>
      %c0_47 = arith.constant 0 : index
      %c0_48 = arith.constant 0 : index
      %78 = vector.load %arg16[%c0_47, %c0_48] : memref<16x128xf32, #tpu.memory_space<vmem>>, vector<16x128xf32>
      tpu.vector_store %arg16[%c0_47, %c0_48], %77 {strides = array<i32>} : memref<16x128xf32, #tpu.memory_space<vmem>>, vector<16x128xf32>,
    } else {
    }
    %c0 = arith.constant 0 : index
    %c0_1 = arith.constant 0 : index
    %3 = vector.load %arg16[%c0, %c0_1] : memref<16x128xf32, #tpu.memory_space<vmem>>, vector<16x128xf32>
    %c0_2 = arith.constant 0 : index
    %c0_3 = arith.constant 0 : index
    %c0_4 = arith.constant 0 : index
    %4 = vector.load %arg2[%c0_2, %c0_3, %c0_4] : memref<1x16x128xbf16, #tpu.memory_space<vmem>>, vector<1x16x128xbf16>
    %5 = vector.shape_cast %4 : vector<1x16x128xbf16> to vector<16x128xbf16>
    %c0_5 = arith.constant 0 : index
    %c0_6 = arith.constant 0 : index
    %6 = vector.load %arg4[%c0_5, %c0_6] : memref<128x128xbf16, #tpu.memory_space<vmem>>, vector<128x128xbf16>
    %cst = arith.constant dense<0.000000e+00> : vector<16x128xf32>
    %7 = tpu.matmul %5, %6, %cst {dimension_numbers = #tpu.dot_dimension_numbers<[1], [0], [0], [1], [0, 0, 1, 1], [], []>} : vector<16x128xbf16>, vector<128x128xbf16>, vector<16x128xf32> -> vector<16x128xf32>
    %c0_7 = arith.constant 0 : index
    %c0_8 = arith.constant 0 : index
    %8 = vector.load %arg5[%c0_7, %c0_8] : memref<1x128xf32, #tpu.memory_space<vmem>>, vector<1x128xf32>
    %9 = vector.broadcast %8 : vector<1x128xf32> to vector<16x128xf32>
    %10 = arith.addf %7, %9 : vector<16x128xf32>
    %cst_9 = arith.constant 0.000000e+00 : f32
    %11 = vector.broadcast %cst_9 : f32 to vector<16x128xf32>
    %12 = arith.maximumf %10, %11 : vector<16x128xf32>
    %13 = arith.truncf %12 : vector<16x128xf32> to vector<16x128xbf16>
    %c0_10 = arith.constant 0 : index
    %c0_11 = arith.constant 0 : index
    %14 = vector.load %arg6[%c0_10, %c0_11] : memref<128x128xbf16, #tpu.memory_space<vmem>>, vector<128x128xbf16>
    %cst_12 = arith.constant dense<0.000000e+00> : vector<16x128xf32>
    %15 = tpu.matmul %13, %14, %cst_12 {dimension_numbers = #tpu.dot_dimension_numbers<[1], [0], [0], [1], [0, 0, 1, 1], [], []>} : vector<16x128xbf16>, vector<128x128xbf16>, vector<16x128xf32> -> vector<16x128xf32>
    %c0_13 = arith.constant 0 : index
    %c0_14 = arith.constant 0 : index
    %16 = vector.load %arg7[%c0_13, %c0_14] : memref<1x128xf32, #tpu.memory_space<vmem>>, vector<1x128xf32>
    %17 = vector.broadcast %16 : vector<1x128xf32> to vector<16x128xf32>
    %18 = arith.addf %15, %17 : vector<16x128xf32>
    %cst_15 = arith.constant 0.000000e+00 : f32
    %19 = vector.broadcast %cst_15 : f32 to vector<16x128xf32>
    %20 = arith.maximumf %18, %19 : vector<16x128xf32>
    %21 = arith.truncf %20 : vector<16x128xf32> to vector<16x128xbf16>
    %c0_16 = arith.constant 0 : index
    %c0_17 = arith.constant 0 : index
    %22 = vector.load %arg8[%c0_16, %c0_17] : memref<128x384xbf16, #tpu.memory_space<vmem>>, vector<128x384xbf16>
    %cst_18 = arith.constant dense<0.000000e+00> : vector<16x384xf32>
    %23 = tpu.matmul %21, %22, %cst_18 {dimension_numbers = #tpu.dot_dimension_numbers<[1], [0], [0], [1], [0, 0, 1, 1], [], []>} : vector<16x128xbf16>, vector<128x384xbf16>, vector<16x384xf32> -> vector<16x384xf32>
    %c0_19 = arith.constant 0 : index
    %c0_20 = arith.constant 0 : index
    %24 = vector.load %arg9[%c0_19, %c0_20] : memref<1x384xf32, #tpu.memory_space<vmem>>, vector<1x384xf32>
    %25 = vector.broadcast %24 : vector<1x384xf32> to vector<16x384xf32>
    %26 = arith.addf %23, %25 : vector<16x384xf32>
    %27 = arith.truncf %3 : vector<16x128xf32> to vector<16x128xbf16>
    %c0_21 = arith.constant 0 : index
    %c0_22 = arith.constant 0 : index
    %28 = vector.load %arg10[%c0_21, %c0_22] : memref<128x384xbf16, #tpu.memory_space<vmem>>, vector<128x384xbf16>
    %cst_23 = arith.constant dense<0.000000e+00> : vector<16x384xf32>
    %29 = tpu.matmul %27, %28, %cst_23 {dimension_numbers = #tpu.dot_dimension_numbers<[1], [0], [0], [1], [0, 0, 1, 1], [], []>} : vector<16x128xbf16>, vector<128x384xbf16>, vector<16x384xf32> -> vector<16x384xf32>
    %c0_24 = arith.constant 0 : index
    %c0_25 = arith.constant 0 : index
    %30 = vector.load %arg11[%c0_24, %c0_25] : memref<1x384xf32, #tpu.memory_space<vmem>>, vector<1x384xf32>
    %31 = vector.broadcast %30 : vector<1x384xf32> to vector<16x384xf32>
    %32 = arith.addf %29, %31 : vector<16x384xf32>
    %33 = vector.extract_strided_slice %26 {offsets = [0, 0], sizes = [16, 128], strides = [1, 1]} : vector<16x384xf32> to vector<16x128xf32>
    %34 = vector.extract_strided_slice %32 {offsets = [0, 0], sizes = [16, 128], strides = [1, 1]} : vector<16x384xf32> to vector<16x128xf32>
    %35 = arith.addf %33, %34 : vector<16x128xf32>
    %cst_26 = arith.constant 5.000000e-01 : f32
    %36 = vector.broadcast %cst_26 : f32 to vector<16x128xf32>
    %37 = arith.mulf %36, %35 : vector<16x128xf32>
    %38 = math.tanh %37 : vector<16x128xf32>
    %cst_27 = arith.constant 5.000000e-01 : f32
    %39 = vector.broadcast %cst_27 : f32 to vector<16x128xf32>
    %40 = arith.mulf %39, %38 : vector<16x128xf32>
    %cst_28 = arith.constant 5.000000e-01 : f32
    %41 = vector.broadcast %cst_28 : f32 to vector<16x128xf32>
    %42 = arith.addf %40, %41 : vector<16x128xf32>
    %43 = vector.extract_strided_slice %26 {offsets = [0, 128], sizes = [16, 128], strides = [1, 1]} : vector<16x384xf32> to vector<16x128xf32>
    %44 = vector.extract_strided_slice %32 {offsets = [0, 128], sizes = [16, 128], strides = [1, 1]} : vector<16x384xf32> to vector<16x128xf32>
    %45 = arith.addf %43, %44 : vector<16x128xf32>
    %cst_29 = arith.constant 5.000000e-01 : f32
    %46 = vector.broadcast %cst_29 : f32 to vector<16x128xf32>
    %47 = arith.mulf %46, %45 : vector<16x128xf32>
    %48 = math.tanh %47 : vector<16x128xf32>
    %cst_30 = arith.constant 5.000000e-01 : f32
    %49 = vector.broadcast %cst_30 : f32 to vector<16x128xf32>
    %50 = arith.mulf %49, %48 : vector<16x128xf32>
    %cst_31 = arith.constant 5.000000e-01 : f32
    %51 = vector.broadcast %cst_31 : f32 to vector<16x128xf32>
    %52 = arith.addf %50, %51 : vector<16x128xf32>
    %53 = vector.extract_strided_slice %26 {offsets = [0, 256], sizes = [16, 128], strides = [1, 1]} : vector<16x384xf32> to vector<16x128xf32>
    %54 = vector.extract_strided_slice %32 {offsets = [0, 256], sizes = [16, 128], strides = [1, 1]} : vector<16x384xf32> to vector<16x128xf32>
    %55 = arith.mulf %42, %54 : vector<16x128xf32>
    %56 = arith.addf %53, %55 : vector<16x128xf32>
    %57 = math.tanh %56 : vector<16x128xf32>
    %cst_32 = arith.constant 1.000000e+00 : f32
    %58 = vector.broadcast %cst_32 : f32 to vector<16x128xf32>
    %59 = arith.subf %58, %52 : vector<16x128xf32>
    %60 = arith.mulf %59, %57 : vector<16x128xf32>
    %61 = arith.mulf %52, %3 : vector<16x128xf32>
    %62 = arith.addf %60, %61 : vector<16x128xf32>
    %63 = arith.truncf %62 : vector<16x128xf32> to vector<16x128xbf16>
    %c0_33 = arith.constant 0 : index
    %c0_34 = arith.constant 0 : index
    %64 = vector.load %arg12[%c0_33, %c0_34] : memref<128x128xbf16, #tpu.memory_space<vmem>>, vector<128x128xbf16>
    %cst_35 = arith.constant dense<0.000000e+00> : vector<16x128xf32>
    %65 = tpu.matmul %63, %64, %cst_35 {dimension_numbers = #tpu.dot_dimension_numbers<[1], [0], [0], [1], [0, 0, 1, 1], [], []>} : vector<16x128xbf16>, vector<128x128xbf16>, vector<16x128xf32> -> vector<16x128xf32>
    %c0_36 = arith.constant 0 : index
    %c0_37 = arith.constant 0 : index
    %66 = vector.load %arg13[%c0_36, %c0_37] : memref<1x128xf32, #tpu.memory_space<vmem>>, vector<1x128xf32>
    %67 = vector.broadcast %66 : vector<1x128xf32> to vector<16x128xf32>
    %68 = arith.addf %65, %67 : vector<16x128xf32>
    %69 = math.tanh %68 : vector<16x128xf32>
    %c0_38 = arith.constant 0 : index
    %c0_39 = arith.constant 0 : index
    %c0_40 = arith.constant 0 : index
    %70 = vector.load %arg14[%c0_38, %c0_39, %c0_40] : memref<1x16x128xf32, #tpu.memory_space<vmem>>, vector<1x16x128xf32>
    %71 = vector.shape_cast %70 : vector<1x16x128xf32> to vector<16x128xf32>
    %72 = vector.shape_cast %69 : vector<16x128xf32> to vector<1x16x128xf32>
    tpu.vector_store %arg14[%c0_38, %c0_39, %c0_40], %72 {strides = array<i32>} : memref<1x16x128xf32, #tpu.memory_space<vmem>>, vector<1x16x128xf32>,
    %c0_41 = arith.constant 0 : index
    %c0_42 = arith.constant 0 : index
    %73 = vector.load %arg16[%c0_41, %c0_42] : memref<16x128xf32, #tpu.memory_space<vmem>>, vector<16x128xf32>
    tpu.vector_store %arg16[%c0_41, %c0_42], %62 {strides = array<i32>} : memref<16x128xf32, #tpu.memory_space<vmem>>, vector<16x128xf32>,
    %c0_i32_43 = arith.constant 0 : i32
    %74 = arith.cmpi eq, %arg1, %c0_i32_43 : i32
    %75 = arith.extui %74 : i1 to i32
    %c0_i32_44 = arith.constant 0 : i32
    %76 = arith.cmpi ne, %75, %c0_i32_44 : i32
    scf.if %76 {
      %c0_45 = arith.constant 0 : index
      %c0_46 = arith.constant 0 : index
      %77 = vector.load %arg15[%c0_45, %c0_46] : memref<16x128xf32, #tpu.memory_space<vmem>>, vector<16x128xf32>
      tpu.vector_store %arg15[%c0_45, %c0_46], %62 {strides = array<i32>} : memref<16x128xf32, #tpu.memory_space<vmem>>, vector<16x128xf32>,
    } else {
    }
    return
  }
  func.func @transform_0(%arg0: i32, %arg1: i32) -> (i32, i32, i32) {
    %c0_i32 = arith.constant 0 : i32
    %c0_i32_0 = arith.constant 0 : i32
    return %arg1, %arg0, %c0_i32 : i32, i32, i32
  }
  func.func @transform_1(%arg0: i32, %arg1: i32) -> (i32, i32) {
    %c0_i32 = arith.constant 0 : i32
    %c0_i32_0 = arith.constant 0 : i32
    return %arg0, %c0_i32 : i32, i32
  }
  func.func @transform_2(%arg0: i32, %arg1: i32) -> (i32, i32) {
    %c0_i32 = arith.constant 0 : i32
    %c0_i32_0 = arith.constant 0 : i32
    %c0_i32_1 = arith.constant 0 : i32
    return %c0_i32, %c0_i32_0 : i32, i32
  }
  func.func @transform_3(%arg0: i32, %arg1: i32) -> (i32, i32) {
    %c0_i32 = arith.constant 0 : i32
    %c0_i32_0 = arith.constant 0 : i32
    %c0_i32_1 = arith.constant 0 : i32
    return %c0_i32, %c0_i32_0 : i32, i32
  }
  func.func @transform_4(%arg0: i32, %arg1: i32) -> (i32, i32) {
    %c0_i32 = arith.constant 0 : i32
    %c0_i32_0 = arith.constant 0 : i32
    %c0_i32_1 = arith.constant 0 : i32
    return %c0_i32, %c0_i32_0 : i32, i32
  }
  func.func @transform_5(%arg0: i32, %arg1: i32) -> (i32, i32) {
    %c0_i32 = arith.constant 0 : i32
    %c0_i32_0 = arith.constant 0 : i32
    %c0_i32_1 = arith.constant 0 : i32
    return %c0_i32, %c0_i32_0 : i32, i32
  }
  func.func @transform_6(%arg0: i32, %arg1: i32) -> (i32, i32) {
    %c0_i32 = arith.constant 0 : i32
    %c0_i32_0 = arith.constant 0 : i32
    %c0_i32_1 = arith.constant 0 : i32
    return %c0_i32, %c0_i32_0 : i32, i32
  }
  func.func @transform_7(%arg0: i32, %arg1: i32) -> (i32, i32) {
    %c0_i32 = arith.constant 0 : i32
    %c0_i32_0 = arith.constant 0 : i32
    %c0_i32_1 = arith.constant 0 : i32
    return %c0_i32, %c0_i32_0 : i32, i32
  }
  func.func @transform_8(%arg0: i32, %arg1: i32) -> (i32, i32) {
    %c0_i32 = arith.constant 0 : i32
    %c0_i32_0 = arith.constant 0 : i32
    %c0_i32_1 = arith.constant 0 : i32
    return %c0_i32, %c0_i32_0 : i32, i32
  }
  func.func @transform_9(%arg0: i32, %arg1: i32) -> (i32, i32) {
    %c0_i32 = arith.constant 0 : i32
    %c0_i32_0 = arith.constant 0 : i32
    %c0_i32_1 = arith.constant 0 : i32
    return %c0_i32, %c0_i32_0 : i32, i32
  }
  func.func @transform_10(%arg0: i32, %arg1: i32) -> (i32, i32) {
    %c0_i32 = arith.constant 0 : i32
    %c0_i32_0 = arith.constant 0 : i32
    %c0_i32_1 = arith.constant 0 : i32
    return %c0_i32, %c0_i32_0 : i32, i32
  }
  func.func @transform_11(%arg0: i32, %arg1: i32) -> (i32, i32) {
    %c0_i32 = arith.constant 0 : i32
    %c0_i32_0 = arith.constant 0 : i32
    %c0_i32_1 = arith.constant 0 : i32
    return %c0_i32, %c0_i32_0 : i32, i32
  }
  func.func @transform_12(%arg0: i32, %arg1: i32) -> (i32, i32, i32) {
    %c0_i32 = arith.constant 0 : i32
    %c0_i32_0 = arith.constant 0 : i32
    return %arg1, %arg0, %c0_i32 : i32, i32, i32
  }
  func.func @transform_13(%arg0: i32, %arg1: i32) -> (i32, i32) {
    %c0_i32 = arith.constant 0 : i32
    %c0_i32_0 = arith.constant 0 : i32
    return %arg0, %c0_i32 : i32, i32
  }
}

</mosaic_0001>

<bundles_post_ra>
// kernel: tpu_custom_call.1
= control target key start
LH: loop header
LB: loop body
LE: loop exit
PB: predicated region body
PF: predicated region fallthrough
CT: control target
= control target key end

     0   :  { %19 = vsyncpa [#allocation4], 0  ;;  %s1857_s0 = inlined_call_operand.hbm [shape: bf16[1,16,128], index: 0, kind: input, shape index: {}]   ;;  %s1858_s1 = inlined_call_operand.hbm [shape: f32[16,128], index: 1, kind: input, shape index: {}]   ;;  %s1859_s2 = inlined_call_operand.hbm [shape: bf16[128,128], index: 2, kind: input, shape index: {}]   ;;  %s1860_s3 = inlined_call_operand.vmem [shape: f32[1,128], index: 3, kind: input, shape index: {}]   ;;  %s1861_s4 = inlined_call_operand.hbm [shape: bf16[128,128], index: 4, kind: input, shape index: {}]   ;;  %s1862_s5 = inlined_call_operand.vmem [shape: f32[1,128], index: 5, kind: input, shape index: {}]   ;;  %s1863_s6 = inlined_call_operand.hbm [shape: bf16[128,384], index: 6, kind: input, shape index: {}]   ;;  %s1864_s7 = inlined_call_operand.vmem [shape: f32[1,384], index: 7, kind: input, shape index: {}]   ;;  %s1865_s8 = inlined_call_operand.hbm [shape: bf16[128,384], index: 8, kind: input, shape index: {}]   ;;  %s1866_s9 = inlined_call_operand.vmem [shape: f32[1,384], index: 9, kind: input, shape index: {}]   ;;  %s1867_s10 = inlined_call_operand.hbm [shape: bf16[128,128], index: 10, kind: input, shape index: {}]   ;;  %s1868_s11 = inlined_call_operand.vmem [shape: f32[1,128], index: 11, kind: input, shape index: {}]   ;;  %s1869_s12 = inlined_call_operand.hbm [shape: f32[1,16,128], index: 12, kind: output, shape index: {0}]   ;;  %s1870_s13 = inlined_call_operand.hbm [shape: f32[16,128], index: 13, kind: output, shape index: {1}]  }
   0x1   :  { %20 = vsyncpa [#allocation7], 0 }
   0x2   :  { %21 = vsyncpa [#allocation10], 0 }
   0x3   :  { %22 = vsyncpa [#allocation13], 0 }
   0x4   :  { %23 = vsyncpa [#allocation5], 0 }
   0x5   :  { %24 = vsyncpa [#allocation17], 0  ;;  %s1642_s25 = smov [#allocation6]  }
   0x6   :  { %s42_s26 = sshll.u32 %s1642_s25, 4  ;;  %s43_s26 = int_to_ptr.vmem [resolvable:$true] %s42_s26 }
   0x7   :  { %s1458_s27 = scalar_lea.vmem %s43_s26, 256  ;;  %p1463_p1 = scmp.lt.s32.totalorder %s43_s26, %s43_s26 }
   0x8   :  { %p1459_p0 = scmp.ne.s32.totalorder %s43_s26, %s1458_s27  ;;  %p1464_p2 = scmp.lt.s32.totalorder %s1458_s27, %s1458_s27 }
   0xa   :  { %p1465_p3 = por %p1464_p2, %p1463_p1 }
   0xc   :  { %p1466_p4 = pnand %p1465_p3, %p1459_p0 }
   0xe   :  { %1469 = shalt.err (!%p1466_p4)
}
   0xf   :  { %s1643_s28 = smov 128   ;;  %s1644_s29 = smov 8  }
  0x10   :  { %48 = dma.hbm_to_vmem [thread:$0]  %s1858_s1, 256, %s43_s26, [#allocation7], %s1643_s28, %s1643_s28, %s1644_s29  }
  0x11   :  { %s1645_s15 = smov [#allocation9]  }
  0x12   :  { %s68_s16 = sshll.u32 %s1645_s15, 4  ;;  %s69_s16 = int_to_ptr.vmem [resolvable:$true] %s68_s16 }
  0x13   :  { %s1478_s17 = scalar_lea.vmem %s69_s16, 1024  ;;  %p1483_p6 = scmp.lt.s32.totalorder %s69_s16, %s69_s16 }
  0x14   :  { %p1479_p5 = scmp.ne.s32.totalorder %s69_s16, %s1478_s17  ;;  %p1484_p7 = scmp.lt.s32.totalorder %s1478_s17, %s1478_s17 }
  0x16   :  { %p1485_p8 = por %p1484_p7, %p1483_p6 }
  0x18   :  { %p1486_p9 = pnand %p1485_p8, %p1479_p5 }
  0x1a   :  { %1489 = shalt.err (!%p1486_p9)
}
  0x1b   :  { %s1646_s18 = smov 64   ;;  %s1647_s19 = smov 4  }
  0x1c   :  { %74 = dma.hbm_to_vmem [thread:$0]  %s1861_s4, 1024, %s69_s16, [#allocation10], %s1646_s18, %s1646_s18, %s1647_s19  }
  0x1d   :  { %s1648_s1 = smov [#allocation12]   ;;  %s1649_s23 = smov [#allocation3]  }
  0x1e   :  { %s96_s22 = sshll.u32 %s1648_s1, 4  ;;  %s30_s24 = sshll.u32 %s1649_s23, 4  ;;  %s97_s22 = int_to_ptr.vmem [resolvable:$true] %s96_s22  ;;  %s31_s24 = int_to_ptr.vmem [resolvable:$true] %s30_s24 }
  0x1f   :  { %s1498_s25 = scalar_lea.vmem %s97_s22, 3072  ;;  %p1503_p11 = scmp.lt.s32.totalorder %s97_s22, %s97_s22 }
  0x20   :  { %p1499_p10 = scmp.ne.s32.totalorder %s97_s22, %s1498_s25  ;;  %p1504_p12 = scmp.lt.s32.totalorder %s1498_s25, %s1498_s25 }
  0x22   :  { %p1505_p13 = por %p1504_p12, %p1503_p11 }
  0x24   :  { %p1506_p0 = pnand %p1505_p13, %p1499_p10 }
  0x26   :  { %1509 = shalt.err (!%p1506_p0)
}
  0x27   :  { %s1650_s26 = smov 192   ;;  %s1651_s27 = smov 12  }
  0x28   :  { %102 = dma.hbm_to_vmem [thread:$0]  %s1865_s8, 3072, %s97_s22, [#allocation13], %s1650_s26, %s1650_s26, %s1651_s27  }
  0x29   :  { %s1518_s14 = scalar_lea.vmem %s31_s24, 128  ;;  %p1523_p2 = scmp.lt.s32.totalorder %s31_s24, %s31_s24 }
  0x2a   :  { %p1519_p1 = scmp.ne.s32.totalorder %s31_s24, %s1518_s14  ;;  %p1524_p3 = scmp.lt.s32.totalorder %s1518_s14, %s1518_s14 }
  0x2c   :  { %p1525_p4 = por %p1524_p3, %p1523_p2 }
  0x2e   :  { %p1526_p5 = pnand %p1525_p4, %p1519_p1 }
  0x30   :  { %1529 = shalt.err (!%p1526_p5)
}
  0x31   :  { %36 = dma.hbm_to_vmem [thread:$0]  %s1857_s0, 128, %s31_s24, [#allocation4], %s1646_s18, %s1646_s18, %s1647_s19  }
  0x32   :  { %s1652_s17 = smov [#allocation8]   ;;  %s1653_s21 = smov [#allocation11]  }
  0x33   :  { %s54_s20 = sshll.u32 %s1652_s17, 4  ;;  %s82_s1 = sshll.u32 %s1653_s21, 4  ;;  %s55_s20 = int_to_ptr.vmem [resolvable:$true] %s54_s20  ;;  %s83_s1 = int_to_ptr.vmem [resolvable:$true] %s82_s1 }
  0x34   :  { %s1538_s8 = scalar_lea.vmem %s55_s20, 1024  ;;  %p1543_p7 = scmp.lt.s32.totalorder %s55_s20, %s55_s20 }
  0x35   :  { %p1539_p6 = scmp.ne.s32.totalorder %s55_s20, %s1538_s8  ;;  %p1544_p8 = scmp.lt.s32.totalorder %s1538_s8, %s1538_s8 }
  0x37   :  { %p1545_p9 = por %p1544_p8, %p1543_p7 }
  0x39   :  { %p1546_p10 = pnand %p1545_p9, %p1539_p6 }
  0x3b   :  { %1549 = shalt.err (!%p1546_p10)
}
  0x3c   :  { %60 = dma.hbm_to_vmem [thread:$0]  %s1859_s2, 1024, %s55_s20, [#allocation7], %s1646_s18, %s1646_s18, %s1647_s19  }
  0x3d   :  { %s1558_s0 = scalar_lea.vmem %s83_s1, 3072  ;;  %p1563_p12 = scmp.lt.s32.totalorder %s83_s1, %s83_s1 }
  0x3e   :  { %p1559_p11 = scmp.ne.s32.totalorder %s83_s1, %s1558_s0  ;;  %p1564_p13 = scmp.lt.s32.totalorder %s1558_s0, %s1558_s0 }
  0x40   :  { %p1565_p0 = por %p1564_p13, %p1563_p12 }
  0x42   :  { %p1566_p1 = pnand %p1565_p0, %p1559_p11 }
  0x44   :  { %1569 = shalt.err (!%p1566_p1)
}
  0x45   :  { %88 = dma.hbm_to_vmem [thread:$0]  %s1863_s6, 3072, %s83_s1, [#allocation10], %s1650_s26, %s1650_s26, %s1651_s27  }
  0x46   :  { %s1654_s30 = smov [#allocation14]  }
  0x47   :  { %s110_s4 = sshll.u32 %s1654_s30, 4  ;;  %s111_s4 = int_to_ptr.vmem [resolvable:$true] %s110_s4 }
  0x48   :  { %s1578_s14 = scalar_lea.vmem %s111_s4, 1024  ;;  %p1583_p3 = scmp.lt.s32.totalorder %s111_s4, %s111_s4 }
  0x49   :  { %p1579_p2 = scmp.ne.s32.totalorder %s111_s4, %s1578_s14  ;;  %p1584_p4 = scmp.lt.s32.totalorder %s1578_s14, %s1578_s14 }
  0x4b   :  { %p1585_p5 = por %p1584_p4, %p1583_p3 }
  0x4d   :  { %p1586_p6 = pnand %p1585_p5, %p1579_p2 }
  0x4f   :  { %1589 = shalt.err (!%p1586_p6)
}
  0x50   :  { %116 = dma.hbm_to_vmem [thread:$0]  %s1867_s10, 1024, %s111_s4, [#allocation13], %s1646_s18, %s1646_s18, %s1647_s19  }
  0x51   :  { %1630 = dma.done.wait [#allocation4], 128  }
  0x52   :  { %1631 = vsyncadd [#allocation4], 4294967168 }
  0x53   :  { %1632 = dma.done.wait [#allocation7], 1280  }
  0x54   :  { %1633 = vsyncadd [#allocation7], 4294966016 }
  0x55   :  { %1634 = dma.done.wait [#allocation10], 4096  }
  0x56   :  { %1635 = vsyncadd [#allocation10], 4294963200 }
  0x57   :  { %1636 = dma.done.wait [#allocation13], 4096  }
  0x58   :  { %1637 = vsyncadd [#allocation13], 4294963200  ;;  %v1655_v0 = vmov 0.0   ;;  %vm1656_vm0 = vmmov 0   ;;  %v1345_v1 = vld [vmem:[#allocation8 + $0x38] sm:$0xff]   ;;  %v1346_v2 = vld [vmem:[#allocation8 + $0x30] sm:$0xff]  }
  0x59   :  { %1227 = vmatprep.subr.bf16.mxu0 %v1655_v0  ;;  %1243 = vmatprep.mubr.msk.bf16.mxu0 %vm1656_vm0, %v1655_v0  ;;  %v1347_v3 = vld [vmem:[#allocation8 + $0x28] sm:$0xff]   ;;  %v1354_v4 = vld [vmem:[#allocation9 + $0x38] sm:$0xff]   ;;  %v1348_v5 = vld [vmem:[#allocation8 + $0x20] sm:$0xff]   ;;  %v1657_v53 = vmov 0  }
  0x5a   :  { %1247 = vmatprep.subr.bf16.mxu1 %v1655_v0  ;;  %1263 = vmatprep.mubr.msk.bf16.mxu1 %vm1656_vm0, %v1655_v0  ;;  %v1355_v6 = vld [vmem:[#allocation9 + $0x30] sm:$0xff]   ;;  %v1349_v7 = vld [vmem:[#allocation8 + $0x18] sm:$0xff]   ;;  %v1356_v8 = vld [vmem:[#allocation9 + $0x28] sm:$0xff]  }
  0x5b   :  { %1228 = vmatpush3.bf16.msra.mxu0 %v1345_v1  ;;  %1248 = vmatpush3.bf16.msra.mxu1 %v1354_v4  ;;  %v1350_v9 = vld [vmem:[#allocation8 + $0x10] sm:$0xff]   ;;  %v1357_v10 = vld [vmem:[#allocation9 + $0x20] sm:$0xff]   ;;  %v1351_v11 = vld [vmem:[#allocation8 + $0x8] sm:$0xff]  }
  0x5c   :  { %1229 = vmatprep.subr.bf16.mxu0 %v1655_v0  ;;  %1249 = vmatprep.subr.bf16.mxu1 %v1655_v0  ;;  %v1358_v12 = vld [vmem:[#allocation9 + $0x18] sm:$0xff]   ;;  %v1352_v13 = vld [vmem:[#allocation8] sm:$0xff]   ;;  %v1353_v14 = vld [vmem:[#allocation3] sm:$0xff]  }
  0x5d   :  { %v1359_v15 = vld [vmem:[#allocation9 + $0x10] sm:$0xff]   ;;  %v1360_v16 = vld [vmem:[#allocation9 + $0x8] sm:$0xff]   ;;  %v1361_v17 = vld [vmem:[#allocation9] sm:$0xff]  }
  0x5e   :  { %v1362_v18 = vld [vmem:[#allocation11 + $0xa8] ss:$12 sps:$4 sm:$0xff]   ;;  %v1364_v19 = vld [vmem:[#allocation11 + $0xac] ss:$12 sps:$4 sm:$0xff]   ;;  %v1366_v21 = vld [vmem:[#allocation11 + $0x90] ss:$12 sps:$4 sm:$0xff]  }
  0x5f   :  { %1230 = vmatpush3.bf16.msra.mxu0 %v1346_v2  ;;  %1250 = vmatpush3.bf16.msra.mxu1 %v1355_v6  ;;  %v1368_v20 = vld [vmem:[#allocation11 + $0x94] ss:$12 sps:$4 sm:$0xff]   ;;  %v1372_v22 = vld [vmem:[#allocation11 + $0x7c] ss:$12 sps:$4 sm:$0xff]   ;;  %v1370_v23 = vld [vmem:[#allocation11 + $0x78] ss:$12 sps:$4 sm:$0xff]  }
  0x60   :  { %1231 = vmatprep.subr.bf16.mxu0 %v1655_v0  ;;  %1251 = vmatprep.subr.bf16.mxu1 %v1655_v0  ;;  %v1376_v24 = vld [vmem:[#allocation11 + $0x64] ss:$12 sps:$4 sm:$0xff]   ;;  %v1374_v25 = vld [vmem:[#allocation11 + $0x60] ss:$12 sps:$4 sm:$0xff]   ;;  %v1378_v27 = vld [vmem:[#allocation11 + $0x48] ss:$12 sps:$4 sm:$0xff]  }
  0x61   :  { %v1380_v26 = vld [vmem:[#allocation11 + $0x4c] ss:$12 sps:$4 sm:$0xff]   ;;  %v1384_v28 = vld [vmem:[#allocation11 + $0x34] ss:$12 sps:$4 sm:$0xff]   ;;  %v1382_v29 = vld [vmem:[#allocation11 + $0x30] ss:$12 sps:$4 sm:$0xff]  }
  0x62   :  { %v1106_v30 = vld [vmem:[%s1860_s3] ss:$0 sm:$0xff]  ;;  %v1365_v39 = vld [vmem:[#allocation11 + $0xb0] ss:$12 sps:$4 sm:$0xff]   ;;  %v1369_v41 = vld [vmem:[#allocation11 + $0x98] ss:$12 sps:$4 sm:$0xff]  }
  0x63   :  { %1232 = vmatpush3.bf16.msra.mxu0 %v1347_v3  ;;  %1252 = vmatpush3.bf16.msra.mxu1 %v1356_v8  ;;  %v1373_v42 = vld [vmem:[#allocation11 + $0x80] ss:$12 sps:$4 sm:$0xff]   ;;  %v1377_v43 = vld [vmem:[#allocation11 + $0x68] ss:$12 sps:$4 sm:$0xff]   ;;  %v1381_v44 = vld [vmem:[#allocation11 + $0x50] ss:$12 sps:$4 sm:$0xff]  }
  0x64   :  { %1233 = vmatprep.subr.bf16.mxu0 %v1655_v0  ;;  %1253 = vmatprep.subr.bf16.mxu1 %v1655_v0  ;;  %v1385_v45 = vld [vmem:[#allocation11 + $0x38] ss:$12 sps:$4 sm:$0xff]   ;;  %v1388_v46 = vld [vmem:[#allocation11 + $0x1c] ss:$12 sps:$4 sm:$0xff]   ;;  %v1389_v48 = vld [vmem:[#allocation11 + $0x20] ss:$12 sps:$4 sm:$0xff]  }
  0x65   :  { %v1386_v47 = vld [vmem:[#allocation11 + $0x18] ss:$12 sps:$4 sm:$0xff]   ;;  %v1390_v50 = vld [vmem:[#allocation11] ss:$12 sps:$4 sm:$0xff]   ;;  %v1393_v51 = vld [vmem:[#allocation11 + $0x8] ss:$12 sps:$4 sm:$0xff]  }
  0x66   :  { %v1392_v49 = vld [vmem:[#allocation11 + $0x4] ss:$12 sps:$4 sm:$0xff]   ;;  %v1396_v52 = vld [vmem:[#allocation12 + $0xac] ss:$12 sps:$4 sm:$0xff]   ;;  %v1116_v54 = vld [vmem:[%s1862_s5] ss:$0 sm:$0xff] }
  0x67   :  { %1234 = vmatpush3.bf16.msra.mxu0 %v1348_v5  ;;  %1254 = vmatpush3.bf16.msra.mxu1 %v1357_v10  ;;  %v1394_v63 = vld [vmem:[#allocation12 + $0xa8] ss:$12 sps:$4 sm:$0xff]   ;;  %v1409_v1 = vld [vmem:[#allocation12 + $0xb0] ss:$12 sps:$4 sm:$0xff]   ;;  %v1413_v5 = vld [vmem:[#allocation12 + $0x98] ss:$12 sps:$4 sm:$0xff]  }
  0x68   :  { %1235 = vmatprep.subr.bf16.mxu0 %v1655_v0  ;;  %1255 = vmatprep.subr.bf16.mxu1 %v1655_v0  ;;  %v1399_v3 = vld [vmem:[#allocation12 + $0x94] ss:$12 sps:$4 sm:$0xff]   ;;  %v1397_v4 = vld [vmem:[#allocation12 + $0x90] ss:$12 sps:$4 sm:$0xff]  }
  0x69   :  { %v1402_v6 = vld [vmem:[#allocation12 + $0x7c] ss:$12 sps:$4 sm:$0xff]   ;;  %v1417_v8 = vld [vmem:[#allocation12 + $0x80] ss:$12 sps:$4 sm:$0xff]  }
  0x6a   :  { %v1403_v10 = vld [vmem:[#allocation12 + $0x60] ss:$12 sps:$4 sm:$0xff]  }
  0x6b   :  { %1236 = vmatpush3.bf16.msra.mxu0 %v1349_v7  ;;  %1256 = vmatpush3.bf16.msra.mxu1 %v1358_v12  ;;  %v1400_v7 = vld [vmem:[#allocation12 + $0x78] ss:$12 sps:$4 sm:$0xff]  }
  0x6c   :  { %1237 = vmatprep.subr.bf16.mxu0 %v1655_v0  ;;  %1257 = vmatprep.subr.bf16.mxu1 %v1655_v0  ;;  %v1408_v12 = vld [vmem:[#allocation12 + $0x4c] ss:$12 sps:$4 sm:$0xff]  }
  0x6f   :  { %1238 = vmatpush3.bf16.msra.mxu0 %v1350_v9  ;;  %1258 = vmatpush3.bf16.msra.mxu1 %v1359_v15  ;;  %v1405_v9 = vld [vmem:[#allocation12 + $0x64] ss:$12 sps:$4 sm:$0xff]   ;;  %v1412_v15 = vld [vmem:[#allocation12 + $0x34] ss:$12 sps:$4 sm:$0xff]  }
  0x70   :  { %1239 = vmatprep.subr.bf16.mxu0 %v1655_v0  ;;  %1259 = vmatprep.subr.bf16.mxu1 %v1655_v0 }
  0x73   :  { %1240 = vmatpush3.bf16.msra.mxu0 %v1351_v11  ;;  %1260 = vmatpush3.bf16.msra.mxu1 %v1360_v16  ;;  %v1421_v11 = vld [vmem:[#allocation12 + $0x68] ss:$12 sps:$4 sm:$0xff]   ;;  %v1410_v16 = vld [vmem:[#allocation12 + $0x30] ss:$12 sps:$4 sm:$0xff]  }
  0x74   :  { %1241 = vmatprep.subr.bf16.mxu0 %v1655_v0  ;;  %1261 = vmatprep.subr.bf16.mxu1 %v1655_v0 }
  0x77   :  { %1242 = vmatpush3.bf16.msra.mxu0 %v1352_v13  ;;  %1262 = vmatpush3.bf16.msra.mxu1 %v1361_v17  ;;  %v1406_v13 = vld [vmem:[#allocation12 + $0x48] ss:$12 sps:$4 sm:$0xff]   ;;  %v1423_v17 = vld [vmem:[#allocation12 + $0x38] ss:$12 sps:$4 sm:$0xff]  }
  0x78   :  { %1267 = vmatprep.subr.bf16.mxu1 %v1655_v0  ;;  %566 = vmatprep.subr.bf16.mxu0 %v1364_v19  ;;  %v1414_v19 = vld [vmem:[#allocation12 + $0x18] ss:$12 sps:$4 sm:$0xff]  }
  0x7a   :  { %1244 = vmatmul.mubr.bf16.vlgmr.msra.gmra.mxu0 %v1353_v14  ;;  %v1422_v14 = vld [vmem:[#allocation12 + $0x50] ss:$12 sps:$4 sm:$0xff]  }
  0x7b   :  { %567 = vmatpush1.bf16.msra.mxu0 %v1362_v18  ;;  %598 = vmatprep.mubr.bf16.mxu0 %v1657_v53  ;;  %v1416_v18 = vld [vmem:[#allocation12 + $0x1c] ss:$12 sps:$4 sm:$0xff]  }
  0x7c   :  { %568 = vmatprep.subr.bf16.mxu0 %v1368_v20  ;;  %v1424_v20 = vld [vmem:[#allocation12 + $0x20] ss:$12 sps:$4 sm:$0xff]  }
  0x7f   :  { %569 = vmatpush1.bf16.msra.mxu0 %v1366_v21  ;;  %v1420_v21 = vld [vmem:[#allocation12 + $0x4] ss:$12 sps:$4 sm:$0xff]  }
  0x80   :  { %570 = vmatprep.subr.bf16.mxu0 %v1372_v22  ;;  %v1418_v22 = vld [vmem:[#allocation12] ss:$12 sps:$4 sm:$0xff]  }
  0x83   :  { %571 = vmatpush1.bf16.msra.mxu0 %v1370_v23  ;;  %v1817_v23 = vld [vmem:[#allocation6] sm:$0xff] }
  0x84   :  { %572 = vmatprep.subr.bf16.mxu0 %v1376_v24  ;;  %v1819_v24 = vld [vmem:[#allocation6 + $0x8] sm:$0xff] }
  0x87   :  { %573 = vmatpush1.bf16.msra.mxu0 %v1374_v25  ;;  %v1425_v25 = vld [vmem:[#allocation12 + $0x8] ss:$12 sps:$4 sm:$0xff]  }
  0x88   :  { %574 = vmatprep.subr.bf16.mxu0 %v1380_v26  ;;  %v650_v26 = vpack.c.bf16 %v1819_v24, %v1817_v23 }
  0x8b   :  { %575 = vmatpush1.bf16.msra.mxu0 %v1378_v27  ;;  %v1426_v27 = vld [vmem:[#allocation14 + $0x38] sm:$0xff]  }
  0x8c   :  { %576 = vmatprep.subr.bf16.mxu0 %v1384_v28  ;;  %v1427_v28 = vld [vmem:[#allocation14 + $0x30] sm:$0xff]  }
  0x8f   :  { %577 = vmatpush1.bf16.msra.mxu0 %v1382_v29  ;;  %v1428_v29 = vld [vmem:[#allocation14 + $0x28] sm:$0xff]  }
  0x90   :  { %578 = vmatprep.subr.bf16.mxu0 %v1388_v46  ;;  %v683_v46 = vld [vmem:[%s1866_s9] sm:$0x7] }
  0x93   :  { %579 = vmatpush1.bf16.msra.mxu0 %v1386_v47 }
  0x94   :  { %580 = vmatprep.subr.bf16.mxu0 %v1392_v49 }
  0x97   :  { %581 = vmatpush1.bf16.msra.mxu0 %v1390_v50 }
  0x98   :  { %828 = vmatprep.subr.bf16.mxu0 %v1396_v52 }
 0x13a   :  { %v264_v31 = vpop.f32.mrf.mxu0 }
 0x13b   :  { %v265_v33 = vadd.f32 %v1106_v30, %v264_v31  ;;  %v1430_v31 = vld [vmem:[#allocation14 + $0x18] sm:$0xff]  }
 0x13c   :  { %v1245_v32 = vpop.f32.mrf.mxu0 }
 0x13d   :  { %v271_v37 = vmax.f32 %v265_v33, 0.0  ;;  %v1431_v32 = vld [vmem:[#allocation14 + $0x10] sm:$0xff]   ;;  %v1432_v33 = vld [vmem:[#allocation14 + $0x8] sm:$0xff]  }
 0x13e   :  { %v267_v34 = vpop.f32.mrf.mxu0 }
 0x13f   :  { %v268_v35 = vadd.f32 %v1106_v30, %v267_v34  ;;  %v1429_v30 = vld [vmem:[#allocation14 + $0x20] sm:$0xff]  }
 0x140   :  { %v1246_v36 = vpop.f32.mrf.mxu0  ;;  %v1433_v34 = vld [vmem:[#allocation14] sm:$0xff]  }
 0x141   :  { %v272_v38 = vmax.f32 %v268_v35, 0.0 }
 0x143   :  { %v273_v40 = vpack.c.bf16 %v272_v38, %v271_v37 }
 0x145   :  { %1264 = vmatmul.mubr.bf16.vlgmr.msra.gmra.mxu1 %v273_v40 }
 0x146   :  { %1268 = vmatpush3.bf16.msra.mxu1 %v1365_v39  ;;  %1283 = vmatprep.mubr.msk.bf16.mxu1 %vm1656_vm0, %v1655_v0  ;;  %v423_v39 = vlaneseq }
 0x147   :  { %1269 = vmatprep.subr.bf16.mxu1 %v1655_v0 }
 0x14a   :  { %1270 = vmatpush3.bf16.msra.mxu1 %v1369_v41  ;;  %v424_v41 = vshrl.u32 %v423_v39, 7 }
 0x14b   :  { %1271 = vmatprep.subr.bf16.mxu1 %v1655_v0 }
 0x14c   :  { %v429_v49 = vsub.s32 1, %v424_v41 }
 0x14e   :  { %1272 = vmatpush3.bf16.msra.mxu1 %v1373_v42 }
 0x14f   :  { %1273 = vmatprep.subr.bf16.mxu1 %v1655_v0 }
 0x152   :  { %1274 = vmatpush3.bf16.msra.mxu1 %v1377_v43  ;;  %v425_v43 = vsub.s32 0, %v424_v41 }
 0x153   :  { %1275 = vmatprep.subr.bf16.mxu1 %v1655_v0 }
 0x154   :  { %v688_v47 = vrot.slane %v683_v46, %v425_v43 }
 0x156   :  { %1276 = vmatpush3.bf16.msra.mxu1 %v1381_v44  ;;  %v421_v44 = vld [vmem:[%s1864_s7] sm:$0x7]  ;;  %s1658_s7 = smov [#allocation16]  }
 0x157   :  { %1277 = vmatprep.subr.bf16.mxu1 %v1655_v0  ;;  %s1087_s9 = sshll.u32 %s1658_s7, 4  ;;  %s1088_s9 = int_to_ptr.vmem [resolvable:$true] %s1087_s9 }
 0x158   :  { %s1590_s16 = scalar_lea.vmem %s1088_s9, 256  ;;  %p1595_p8 = scmp.lt.s32.totalorder %s1088_s9, %s1088_s9 }
 0x159   :  { %p1591_p7 = scmp.ne.s32.totalorder %s1088_s9, %s1590_s16  ;;  %p1596_p9 = scmp.lt.s32.totalorder %s1590_s16, %s1590_s16 }
 0x15a   :  { %1278 = vmatpush3.bf16.msra.mxu1 %v1385_v45 }
 0x15b   :  { %1279 = vmatprep.subr.bf16.mxu1 %v1655_v0  ;;  %p1597_p10 = por %p1596_p9, %p1595_p8 }
 0x15d   :  { %p1598_p11 = pnand %p1597_p10, %p1591_p7 }
 0x15e   :  { %1280 = vmatpush3.bf16.msra.mxu1 %v1389_v48 }
 0x15f   :  { %1281 = vmatprep.subr.bf16.mxu1 %v1655_v0 }
 0x162   :  { %1282 = vmatpush3.bf16.msra.mxu1 %v1393_v51 }
 0x163   :  { %1287 = vmatprep.subr.bf16.mxu1 %v1655_v0 }
 0x205   :  { %v379_v55 = vpop.f32.mrf.mxu1 }
 0x206   :  { %v380_v57 = vadd.f32 %v1116_v54, %v379_v55 }
 0x207   :  { %v1265_v56 = vpop.f32.mrf.mxu1 }
 0x208   :  { %v386_v61 = vmax.f32 %v380_v57, 0.0  ;;  %v430_v57 = vrot.slane %v421_v44, %v429_v49 }
 0x209   :  { %v382_v58 = vpop.f32.mrf.mxu1 }
 0x20a   :  { %v383_v59 = vadd.f32 %v1116_v54, %v382_v58  ;;  %v692_v54 = vrot.slane %v683_v46, %v429_v49 }
 0x20b   :  { %v1266_v60 = vpop.f32.mrf.mxu1 }
 0x20c   :  { %v387_v62 = vmax.f32 %v383_v59, 0.0 }
 0x20e   :  { %v388_v2 = vpack.c.bf16 %v387_v62, %v386_v61 }
 0x210   :  { %599 = vmatmul.mubr.bf16.vlgmr.msra.gmra.mxu0 %v388_v2  ;;  %1284 = vmatmul.mubr.bf16.vlgmr.msra.gmra.mxu1 %v388_v2 }
 0x211   :  { %829 = vmatpush1.bf16.msra.mxu0 %v1394_v63  ;;  %1288 = vmatpush3.bf16.msra.mxu1 %v1409_v1 }
 0x212   :  { %830 = vmatprep.subr.bf16.mxu0 %v1399_v3  ;;  %1289 = vmatprep.subr.bf16.mxu1 %v1655_v0 }
 0x213   :  { %860 = vmatprep.mubr.bf16.mxu0 %v1657_v53  ;;  %1303 = vmatprep.mubr.msk.bf16.mxu1 %vm1656_vm0, %v1655_v0 }
 0x215   :  { %831 = vmatpush1.bf16.msra.mxu0 %v1397_v4  ;;  %1290 = vmatpush3.bf16.msra.mxu1 %v1413_v5 }
 0x216   :  { %832 = vmatprep.subr.bf16.mxu0 %v1402_v6  ;;  %1291 = vmatprep.subr.bf16.mxu1 %v1655_v0 }
 0x219   :  { %833 = vmatpush1.bf16.msra.mxu0 %v1400_v7  ;;  %1292 = vmatpush3.bf16.msra.mxu1 %v1417_v8 }
 0x21a   :  { %834 = vmatprep.subr.bf16.mxu0 %v1405_v9  ;;  %1293 = vmatprep.subr.bf16.mxu1 %v1655_v0 }
 0x21d   :  { %835 = vmatpush1.bf16.msra.mxu0 %v1403_v10  ;;  %1294 = vmatpush3.bf16.msra.mxu1 %v1421_v11 }
 0x21e   :  { %836 = vmatprep.subr.bf16.mxu0 %v1408_v12  ;;  %1295 = vmatprep.subr.bf16.mxu1 %v1655_v0  ;;  %v433_v12 = vsub.s32 2, %v424_v41 }
 0x221   :  { %837 = vmatpush1.bf16.msra.mxu0 %v1406_v13  ;;  %1296 = vmatpush3.bf16.msra.mxu1 %v1422_v14  ;;  %v696_v13 = vrot.slane %v683_v46, %v433_v12 }
 0x222   :  { %838 = vmatprep.subr.bf16.mxu0 %v1412_v15  ;;  %1297 = vmatprep.subr.bf16.mxu1 %v1655_v0 }
 0x225   :  { %839 = vmatpush1.bf16.msra.mxu0 %v1410_v16  ;;  %1298 = vmatpush3.bf16.msra.mxu1 %v1423_v17  ;;  %v434_v16 = vrot.slane %v421_v44, %v433_v12 }
 0x226   :  { %840 = vmatprep.subr.bf16.mxu0 %v1416_v18  ;;  %1299 = vmatprep.subr.bf16.mxu1 %v1655_v0 }
 0x229   :  { %841 = vmatpush1.bf16.msra.mxu0 %v1414_v19  ;;  %1300 = vmatpush3.bf16.msra.mxu1 %v1424_v20 }
 0x22a   :  { %842 = vmatprep.subr.bf16.mxu0 %v1420_v21  ;;  %1301 = vmatprep.subr.bf16.mxu1 %v1655_v0 }
 0x22d   :  { %843 = vmatpush1.bf16.msra.mxu0 %v1418_v22  ;;  %1302 = vmatpush3.bf16.msra.mxu1 %v1425_v25 }
 0x22e   :  { %1307 = vmatprep.subr.bf16.mxu0 %v1655_v0 }
 0x230   :  { %861 = vmatmul.mubr.bf16.vlgmr.msra.gmra.mxu0 %v650_v26  ;;  %1304 = vmatmul.mubr.bf16.vlgmr.msra.gmra.mxu1 %v650_v26 }
 0x231   :  { %1323 = vmatprep.mubr.msk.bf16.mxu0 %vm1656_vm0, %v1655_v0  ;;  %1308 = vmatpush3.bf16.msra.mxu0 %v1426_v27 }
 0x232   :  { %1309 = vmatprep.subr.bf16.mxu0 %v1655_v0 }
 0x235   :  { %1310 = vmatpush3.bf16.msra.mxu0 %v1427_v28 }
 0x236   :  { %1311 = vmatprep.subr.bf16.mxu0 %v1655_v0 }
 0x239   :  { %1312 = vmatpush3.bf16.msra.mxu0 %v1428_v29 }
 0x23a   :  { %1313 = vmatprep.subr.bf16.mxu0 %v1655_v0 }
 0x23d   :  { %1314 = vmatpush3.bf16.msra.mxu0 %v1429_v30 }
 0x23e   :  { %1315 = vmatprep.subr.bf16.mxu0 %v1655_v0 }
 0x241   :  { %1316 = vmatpush3.bf16.msra.mxu0 %v1430_v31 }
 0x242   :  { %1317 = vmatprep.subr.bf16.mxu0 %v1655_v0 }
 0x245   :  { %1318 = vmatpush3.bf16.msra.mxu0 %v1431_v32 }
 0x246   :  { %1319 = vmatprep.subr.bf16.mxu0 %v1655_v0 }
 0x249   :  { %1320 = vmatpush3.bf16.msra.mxu0 %v1432_v33 }
 0x24a   :  { %1321 = vmatprep.subr.bf16.mxu0 %v1655_v0  ;;  %v426_v0 = vrot.slane %v421_v44, %v425_v43 }
 0x24d   :  { %1322 = vmatpush3.bf16.msra.mxu0 %v1433_v34 }
 0x2d0   :  { %v643_v35 = vpop.f32.mrf.mxu1  ;;  %v600_v40 = vpop.f32.mrf.mxu0 }
 0x2d1   :  { %v601_v52 = vadd.f32 %v600_v40, %v426_v0  ;;  %v644_v21 = vadd.f32 %v643_v35, %v434_v16 }
 0x2d2   :  { %v1285_v36 = vpop.f32.mrf.mxu1  ;;  %v602_v42 = vpop.f32.mrf.mxu0 }
 0x2d3   :  { %v603_v3 = vadd.f32 %v602_v42, %v430_v57 }
 0x2d4   :  { %v646_v37 = vpop.f32.mrf.mxu1  ;;  %v604_v45 = vpop.f32.mrf.mxu0 }
 0x2d5   :  { %v605_v61 = vadd.f32 %v604_v45, %v426_v0  ;;  %v647_v30 = vadd.f32 %v646_v37, %v434_v16 }
 0x2d6   :  { %v1286_v38 = vpop.f32.mrf.mxu1  ;;  %v606_v48 = vpop.f32.mrf.mxu0 }
 0x2d7   :  { %v607_v9 = vadd.f32 %v606_v48, %v430_v57 }
 0x2f0   :  { %v862_v50 = vpop.f32.mrf.mxu0  ;;  %v905_v51 = vpop.f32.mrf.mxu1 }
 0x2f1   :  { %v863_v53 = vadd.f32 %v862_v50, %v688_v47  ;;  %v906_v17 = vadd.f32 %v905_v51, %v696_v13 }
 0x2f2   :  { %v864_v55 = vpop.f32.mrf.mxu0  ;;  %v1305_v56 = vpop.f32.mrf.mxu1 }
 0x2f3   :  { %v912_v58 = vadd.f32 %v863_v53, %v601_v52  ;;  %v865_v63 = vadd.f32 %v864_v55, %v692_v54 }
 0x2f4   :  { %v866_v59 = vpop.f32.mrf.mxu0  ;;  %v908_v60 = vpop.f32.mrf.mxu1 }
 0x2f5   :  { %v914_v62 = vmul.f32 0.5, %v912_v58  ;;  %v867_v1 = vadd.f32 %v866_v59, %v688_v47  ;;  %v922_v6 = vadd.f32 %v865_v63, %v603_v3  ;;  %v909_v27 = vadd.f32 %v908_v60, %v696_v13 }
 0x2f6   :  { %v1306_v2 = vpop.f32.mrf.mxu1  ;;  %v868_v5 = vpop.f32.mrf.mxu0 }
 0x2f7   :  { %1434 = vtanh.f32 %v914_v62  ;;  %v913_v4 = vadd.f32 %v867_v1, %v605_v61  ;;  %v869_v8 = vadd.f32 %v868_v5, %v692_v54  ;;  %v924_v10 = vmul.f32 0.5, %v922_v6 }
 0x2f9   :  { %v915_v7 = vmul.f32 0.5, %v913_v4  ;;  %v923_v11 = vadd.f32 %v869_v8, %v607_v9 }
 0x2fb   :  { %1436 = vtanh.f32 %v915_v7  ;;  %v925_v14 = vmul.f32 0.5, %v923_v11 }
 0x2fc   :  { %1438 = vtanh.f32 %v924_v10 }
 0x2fd   :  { %1440 = vtanh.f32 %v925_v14 }
 0x304   :  { %v1435_v15 = vpop.eup %1434 }
 0x305   :  { %v918_v18 = vmul.f32 0.5, %v1435_v15 }
 0x307   :  { %v920_v19 = vadd.f32 0.5, %v918_v18 }
 0x308   :  { %v1437_v20 = vpop.eup %1436 }
 0x309   :  { %v932_v22 = vmul.f32 %v920_v19, %v906_v17  ;;  %v919_v25 = vmul.f32 0.5, %v1437_v20  ;;  %v1439_v29 = vpop.eup %1438 }
 0x30a   :  { %v928_v33 = vmul.f32 0.5, %v1439_v29  ;;  %v1441_v34 = vpop.eup %1440 }
 0x30b   :  { %v934_v26 = vadd.f32 %v932_v22, %v644_v21  ;;  %v921_v28 = vadd.f32 0.5, %v919_v25  ;;  %v929_v38 = vmul.f32 0.5, %v1441_v34 }
 0x30c   :  { %v930_v36 = vadd.f32 0.5, %v928_v33 }
 0x30d   :  { %1442 = vtanh.f32 %v934_v26  ;;  %v933_v31 = vmul.f32 %v921_v28, %v909_v27  ;;  %v931_v41 = vadd.f32 0.5, %v929_v38 }
 0x30e   :  { %v938_v39 = vsub.f32 1.0, %v930_v36  ;;  %v942_v35 = vmul.f32 %v930_v36, %v1817_v23 }
 0x30f   :  { %v935_v32 = vadd.f32 %v933_v31, %v647_v30  ;;  %v939_v44 = vsub.f32 1.0, %v931_v41  ;;  %v943_v46 = vmul.f32 %v931_v41, %v1819_v24 }
 0x311   :  { %1444 = vtanh.f32 %v935_v32 }
 0x31a   :  { %v1443_v40 = vpop.eup %1442 }
 0x31b   :  { %v940_v42 = vmul.f32 %v1443_v40, %v938_v39 }
 0x31d   :  { %v944_v43 = vadd.f32 %v942_v35, %v940_v42 }
 0x31e   :  { %v1445_v45 = vpop.eup %1444 }
 0x31f   :  { %1068 = vst [vmem:[#allocation16] sm:$0xff] %v944_v43  ;;  %v941_v37 = vmul.f32 %v1445_v45, %v939_v44 }
 0x321   :  { %v945_v0 = vadd.f32 %v943_v46, %v941_v37 }
 0x323   :  { %v946_v47 = vpack.c.bf16 %v945_v0, %v944_v43  ;;  %1069 = vst [vmem:[#allocation16 + $0x8] sm:$0xff] %v945_v0 }
 0x325   :  { %1324 = vmatmul.mubr.bf16.vlgmr.msra.gmra.mxu0 %v946_v47 }
 0x326   :  { %1601 = shalt.err (!%p1598_p11)
}
 0x327   :  { %1093 = dma.vmem_to_hbm [thread:$0]  %s1088_s9, 256, %s1870_s13, [#allocation17], %s1643_s28, %s1643_s28, %s1644_s29  }
 0x328   :  { %v1173_v23 = vld [vmem:[%s1868_s11] ss:$0 sm:$0xff]  ;;  %s1659_s8 = smov [#allocation15]  }
 0x329   :  { %s1075_s22 = sshll.u32 %s1659_s8, 4  ;;  %s1076_s22 = int_to_ptr.vmem [resolvable:$true] %s1075_s22 }
 0x32a   :  { %s1610_s13 = scalar_lea.vmem %s1076_s22, 256  ;;  %p1615_p13 = scmp.lt.s32.totalorder %s1076_s22, %s1076_s22 }
 0x32b   :  { %p1611_p12 = scmp.ne.s32.totalorder %s1076_s22, %s1610_s13  ;;  %p1616_p0 = scmp.lt.s32.totalorder %s1610_s13, %s1610_s13 }
 0x32d   :  { %p1617_p1 = por %p1616_p0, %p1615_p13 }
 0x32f   :  { %p1618_p2 = pnand %p1617_p1, %p1611_p12 }
 0x3e5   :  { %v1052_v24 = vpop.f32.mrf.mxu0 }
 0x3e6   :  { %v1053_v48 = vadd.f32 %v1173_v23, %v1052_v24 }
 0x3e7   :  { %v1325_v49 = vpop.f32.mrf.mxu0 }
 0x3e8   :  { %1446 = vtanh.f32 %v1053_v48 }
 0x3e9   :  { %v1055_v50 = vpop.f32.mrf.mxu0 }
 0x3ea   :  { %v1056_v51 = vadd.f32 %v1173_v23, %v1055_v50 }
 0x3eb   :  { %v1326_v52 = vpop.f32.mrf.mxu0 }
 0x3ec   :  { %1448 = vtanh.f32 %v1056_v51 }
 0x3f5   :  { %v1447_v53 = vpop.eup %1446 }
 0x3f6   :  { %1061 = vst [vmem:[#allocation15] sm:$0xff] %v1447_v53 }
 0x3f9   :  { %v1449_v54 = vpop.eup %1448 }
 0x3fa   :  { %1062 = vst [vmem:[#allocation15 + $0x8] sm:$0xff] %v1449_v54 }
 0x3fb   :  { %1621 = shalt.err (!%p1618_p2)
}
 0x3fc   :  { %1081 = dma.vmem_to_hbm [thread:$0]  %s1076_s22, 256, %s1869_s12, [#allocation5], %s1643_s28, %s1643_s28, %s1644_s29  }
 0x3fd   :  { %1638 = dma.done.wait [#allocation5], 256  }
 0x3fe   :  { %1639 = vsyncadd [#allocation5], 4294967040 }
 0x3ff   :  { %1640 = dma.done.wait [#allocation17], 256  }
 0x400   :  { %1641 = vsyncadd [#allocation17], 4294967040 }
 0x401   :  { %1100 = vsyncpa [#allocation4], 1 }
 0x402   :  { %1101 = vsyncpa [#allocation7], 1 }
 0x403   :  { %1102 = vsyncpa [#allocation10], 1 }
 0x404   :  { %1103 = vsyncpa [#allocation13], 1 }
 0x405   :  { %1104 = vsyncpa [#allocation5], 1 }
 0x406   :  { %1105 = vsyncpa [#allocation17], 1 }

</bundles_post_ra>
